<compile_context>
chip_gen: v7x
topology: tpu7x:2x2x1
jax: 0.10.0
libtpu: 0.0.40
codegen_flags: <defaults>
</compile_context>

<pallas_src>
import math

import jax
import jax.numpy as jnp
from jax.experimental import pallas as pl
from jax.experimental.pallas import tpu as pltpu

TEMPERATURE = 0.5
INV_TEMPERATURE = 1.0 / TEMPERATURE
LIMIT_A = -0.1
LIMIT_B = 1.1
EPSILON = 1e-6

_LANE = 128
_SUBLANE = 8
_MAX_FLAT_WIDTH = 4096  # cap on the lcm(D,128) flattened row width


def _device_kind():
    try:
        return jax.devices()[0].device_kind.lower()
    except Exception:
        return ""


def _chip_tuning(kind):
    """Returns (per-slab tile bytes, vmem_limit_bytes or None, bf16-VALU available)."""
    if "v7" in kind:
        # 64 MiB physical VMEM: 3 slabs x 2 buffers x 6 MiB = 36 MiB < 48 MiB limit.
        return 6 << 20, 48 << 20, True
    if "v6" in kind:
        # 128 MiB physical VMEM; raise the scoped limit well past the 32 MiB default.
        return 6 << 20, 64 << 20, True
    # v5e (16 MiB default scoped VMEM), v4/v5p, CPU-interpret: stay small, keep default limit.
    return 2 << 20, None, False


def _compute_gate(log_logit, u):
    # Hard-concrete stochastic gate (computed once; a (D,)-sized XLA op).
    s = jax.nn.sigmoid((jnp.log(u) - jnp.log(1.0 - u) + log_logit) * INV_TEMPERATURE)
    z = s * (LIMIT_B - LIMIT_A) + LIMIT_A
    return jnp.clip(z, 0.0, 1.0)


def _mix_kernel(gate_ref, prev_ref, perm_ref, out_ref):
    # gate_ref is (1, W) and stays VMEM-resident across grid steps (constant block index).
    g = gate_ref[...]
    # Exact PyTorch form: prev*gate + perm*(1-gate)  (bit-exact pass-through at gate==1).
    out_ref[...] = (prev_ref[...] * g + perm_ref[...] * (1.0 - g)).astype(out_ref.dtype)


def _gate_kernel(gate_ref, prev_ref, out_ref):
    out_ref[...] = (prev_ref[...] * gate_ref[...]).astype(out_ref.dtype)


def _hcselector_forward(prev_x, permuted_x, log_logit, u):
    """prev_x: (B, D); permuted_x: (B, D) or None; log_logit, u: (D,)."""
    B, D = prev_x.shape
    out_dtype = prev_x.dtype

    kind = _device_kind()
    tile_bytes, vmem_limit, bf16_ok = _chip_tuning(kind)

    # Compute dtype for the blend: keep big slabs packed (bf16) only where the
    # VPU supports bf16 (v6e/v7x); otherwise promote to f32 via the gate dtype.
    if out_dtype == jnp.bfloat16 and bf16_ok:
        compute_dtype = jnp.bfloat16
    else:
        compute_dtype = jnp.float32

    gate = _compute_gate(log_logit.astype(jnp.float32), u.astype(jnp.float32))

    # ---- lane-dense 2-D layout without padding/copying the big arrays --------
    width, reps, reshaped = D, 1, False
    if D % _LANE != 0:
        L = (D * _LANE) // math.gcd(D, _LANE)  # lcm(D, 128)
        if (B * D) % L == 0 and L <= _MAX_FLAT_WIDTH:
            width, reps, reshaped = L, L // D, True

    if reshaped:
        nrows = (B * D) // width
        prev2d = prev_x.reshape(nrows, width)
        perm2d = None if permuted_x is None else permuted_x.reshape(nrows, width)
        gate_row = jnp.tile(gate, reps)  # feature index of flat element j is j % D
    else:
        nrows = B
        prev2d = prev_x
        perm2d = permuted_x
        gate_row = gate
    gate2d = gate_row.reshape(1, width).astype(compute_dtype)

    # ---- batch-row tile: sized from the actual dtype, multiple of 8 sublanes --
    itemsize = jnp.dtype(out_dtype).itemsize
    rows = max(_SUBLANE, (tile_bytes // (width * itemsize)) // _SUBLANE * _SUBLANE)
    # Full-extent block is always legal; otherwise a multiple of 8 with a partial
    # (masked) last block — no padding of the big arrays required.
    TB = nrows if rows >= nrows else rows
    grid = (pl.cdiv(nrows, TB),)

    vec_spec = pl.BlockSpec((1, width), lambda i: (0, 0))      # resident gate
    mat_spec = pl.BlockSpec((TB, width), lambda i: (i, 0))     # streamed slabs
    cparams = pltpu.CompilerParams(
        dimension_semantics=("parallel",),
        vmem_limit_bytes=vmem_limit,
    )
    out_shape = jax.ShapeDtypeStruct((nrows, width), out_dtype)

    if perm2d is None:
        out = pl.pallas_call(
            _gate_kernel,
            out_shape=out_shape,
            grid=grid,
            in_specs=[vec_spec, mat_spec],
            out_specs=mat_spec,
            compiler_params=cparams,
        )(gate2d, prev2d)
    else:
        out = pl.pallas_call(
            _mix_kernel,
            out_shape=out_shape,
            grid=grid,
            in_specs=[vec_spec, mat_spec, mat_spec],
            out_specs=mat_spec,
            compiler_params=cparams,
        )(gate2d, prev2d, perm2d)

    return out.reshape(B, D) if reshaped else out


# jit the wrapper so gate prep / reshapes fuse and dispatch overhead disappears.
hcselector_forward = jax.jit(_hcselector_forward)


def reference_forward(prev_x, permuted_x, log_logit, u):
    gate = _compute_gate(log_logit.astype(jnp.float32), u.astype(jnp.float32))[None, :]
    if permuted_x is None:
        return (prev_x * gate).astype(prev_x.dtype)
    return (prev_x * gate + permuted_x * (1.0 - gate)).astype(prev_x.dtype)


def _run_case(key, batch, input_dim, dtype=jnp.float32, atol=1e-5):
    k1, k2, k3, k4 = jax.random.split(key, 4)
    # Parameters / buffers (deterministic, mimicking __init__ + forward's u.uniform_).
    log_logit = 0.01 * jax.random.normal(k1, (input_dim,), dtype=jnp.float32)
    u = jax.random.uniform(
        k2, (input_dim,), minval=EPSILON, maxval=1.0 - EPSILON, dtype=jnp.float32
    )
    prev_x = jax.random.normal(k3, (batch, input_dim), dtype=jnp.float32).astype(dtype)
    permuted_x = jax.random.normal(k4, (batch, input_dim), dtype=jnp.float32).astype(dtype)

    # Branch with permuted_x.
    out_mix = jax.block_until_ready(hcselector_forward(prev_x, permuted_x, log_logit, u))
    ref_mix = reference_forward(prev_x, permuted_x, log_logit, u)
    assert out_mix.shape == prev_x.shape and out_mix.dtype == prev_x.dtype
    assert jnp.allclose(out_mix.astype(jnp.float32), ref_mix.astype(jnp.float32),
                        atol=atol, rtol=1e-3)

    # Branch with permuted_x == None.
    out_gate = jax.block_until_ready(hcselector_forward(prev_x, None, log_logit, u))
    ref_gate = reference_forward(prev_x, None, log_logit, u)
    assert jnp.allclose(out_gate.astype(jnp.float32), ref_gate.astype(jnp.float32),
                        atol=atol, rtol=1e-3)


if __name__ == "__main__":
    key = jax.random.PRNGKey(0)
    ka, kb, kc = jax.random.split(key, 3)

    # HCSelector(input_dim=32) on a batch of 8 -> lane-flattened (2, 128) path.
    _run_case(ka, batch=8, input_dim=32)
    # Awkward shapes (B=5, D=200) -> full-extent blocks, no padding copies.
    _run_case(kb, batch=5, input_dim=200)
    # bf16 inputs: bf16 compute on v6e/v7x, f32 compute elsewhere.
    _run_case(kc, batch=16, input_dim=256, dtype=jnp.bfloat16, atol=6e-2)

    # TODO(synk): regularizer_all / regularizer_group / get_gates are training-time
    # scalar penalties / numpy utilities (not part of forward); not implemented as kernels.
    print("KERNEL_OK")
</pallas_src>

<mosaic_0001>
module attributes {stable_mosaic.version = 11 : i64} {
  func.func @_mix_kernel(%arg0: i32, %arg1: memref<1x128xf32, #tpu.memory_space<vmem>>, %arg2: memref<2x128xf32, #tpu.memory_space<vmem>>, %arg3: memref<2x128xf32, #tpu.memory_space<vmem>>, %arg4: memref<2x128xf32, #tpu.memory_space<vmem>>) attributes {dimension_semantics = [#tpu.dimension_semantics<parallel>], iteration_bounds = array<i64: 1>, scalar_prefetch = 0 : i64, scratch_operands = 0 : i64, tpu.core_type = #tpu.core_type<tc>, window_params = [{pipeline_mode = #tpu.pipeline_mode<synchronous>, transform_indices = @transform_0, window_bounds = array<i64: 1, 128>}, {transform_indices = @transform_1, window_bounds = array<i64: 2, 128>}, {transform_indices = @transform_2, window_bounds = array<i64: 2, 128>}, {transform_indices = @transform_3, window_bounds = array<i64: 2, 128>}]} {
    %c0 = arith.constant 0 : index
    %c0_0 = arith.constant 0 : index
    %0 = vector.load %arg1[%c0, %c0_0] : memref<1x128xf32, #tpu.memory_space<vmem>>, vector<1x128xf32>
    %c0_1 = arith.constant 0 : index
    %c0_2 = arith.constant 0 : index
    %1 = vector.load %arg2[%c0_1, %c0_2] : memref<2x128xf32, #tpu.memory_space<vmem>>, vector<2x128xf32>
    %2 = vector.broadcast %0 : vector<1x128xf32> to vector<2x128xf32>
    %3 = arith.mulf %1, %2 : vector<2x128xf32>
    %c0_3 = arith.constant 0 : index
    %c0_4 = arith.constant 0 : index
    %4 = vector.load %arg3[%c0_3, %c0_4] : memref<2x128xf32, #tpu.memory_space<vmem>>, vector<2x128xf32>
    %cst = arith.constant 1.000000e+00 : f32
    %5 = vector.broadcast %cst : f32 to vector<1x128xf32>
    %6 = arith.subf %5, %0 : vector<1x128xf32>
    %7 = vector.broadcast %6 : vector<1x128xf32> to vector<2x128xf32>
    %8 = arith.mulf %4, %7 : vector<2x128xf32>
    %9 = arith.addf %3, %8 : vector<2x128xf32>
    %c0_5 = arith.constant 0 : index
    %c0_6 = arith.constant 0 : index
    %10 = vector.load %arg4[%c0_5, %c0_6] : memref<2x128xf32, #tpu.memory_space<vmem>>, vector<2x128xf32>
    tpu.vector_store %arg4[%c0_5, %c0_6], %9 {strides = array<i32>} : memref<2x128xf32, #tpu.memory_space<vmem>>, vector<2x128xf32>,
    return
  }
  func.func @transform_0(%arg0: i32) -> (i32, i32) {
    %c0_i32 = arith.constant 0 : i32
    %c0_i32_0 = arith.constant 0 : i32
    %c0_i32_1 = arith.constant 0 : i32
    return %c0_i32, %c0_i32_0 : i32, i32
  }
  func.func @transform_1(%arg0: i32) -> (i32, i32) {
    %c0_i32 = arith.constant 0 : i32
    %c0_i32_0 = arith.constant 0 : i32
    return %arg0, %c0_i32 : i32, i32
  }
  func.func @transform_2(%arg0: i32) -> (i32, i32) {
    %c0_i32 = arith.constant 0 : i32
    %c0_i32_0 = arith.constant 0 : i32
    return %arg0, %c0_i32 : i32, i32
  }
  func.func @transform_3(%arg0: i32) -> (i32, i32) {
    %c0_i32 = arith.constant 0 : i32
    %c0_i32_0 = arith.constant 0 : i32
    return %arg0, %c0_i32 : i32, i32
  }
}

</mosaic_0001>

<bundles_post_ra>
// kernel: tile.8
= control target key start
LH: loop header
LB: loop body
LE: loop exit
PB: predicated region body
PF: predicated region fallthrough
CT: control target
= control target key end

     0   :  { %s22_s0 = inlined_call_operand.vmem [shape: f32[32], index: 0, kind: input, shape index: {}]   ;;  %s23_s1 = inlined_call_operand.vmem [shape: f32[4,32], index: 1, kind: output, shape index: {}]  }
   0x1   :  { %v4_v0 = vld [vmem:[%s22_s0] ss:$0 sm:$0xff] }
   0x2   :  { %5 = vst [vmem:[%s23_s1] sm:$0xf] %v4_v0 }

// kernel: tile.9
= control target key start
LH: loop header
LB: loop body
LE: loop exit
PB: predicated region body
PF: predicated region fallthrough
CT: control target
= control target key end

     0   :  { %vm7_vm0 = vcmask 261120   ;;  %s37_s8 = smov 32   ;;  %s38_s9 = smov 64   ;;  %vm13_vm1 = vcmask 1048320   ;;  %vm19_vm2 = vcmask 785920   ;;  %vm25_vm3 = vcmask 523520   ;;  %s55_s0 = inlined_call_operand.vmem [shape: f32[4,32], index: 0, kind: input, shape index: {}]   ;;  %s56_s1 = inlined_call_operand.vmem [shape: f32[1,128], index: 1, kind: output, shape index: {}]  }
   0x1   :  { %v4_v0 = vld [vmem:[%s55_s0] sm:$0xf]  ;;  %s36_s0 = smov 96  }
   0x2   :  { %5 = vst [vmem:[#allocation1] sm:$0xf] %v4_v0 }
   0x9   :  { %v10_v1 = vld [vmem:[#allocation1 + $0x3] sm:$0x1]   ;;  %v22_v2 = vld [vmem:[#allocation1 + $0x1] sm:$0x1]   ;;  %v6_v3 = vld [vmem:[#allocation1] sm:$0x1]  }
   0xa   :  { %11 = vrot.lane.b32.xlu0 %v10_v1, %s36_s0  ;;  %23 = vrot.lane.b32.xlu1 %v22_v2, %s37_s8  ;;  %v16_v4 = vld [vmem:[#allocation1 + $0x2] sm:$0x1]   ;;  %8 = vst.msk [vmem:[#allocation0] sm:$0x1] %vm7_vm0, %v6_v3  }
   0xe   :  { %17 = vrot.lane.b32.xlu0 %v16_v4, %s38_s9 }
  0x7c   :  { %v12_v5 = vpop.permute.xlu0 %11   ;;  %v24_v6 = vpop.permute.xlu1 %23  }
  0x7d   :  { %14 = vst.msk [vmem:[#allocation0] sm:$0x1] %vm13_vm1, %v12_v5  }
  0x80   :  { %v18_v7 = vpop.permute.xlu0 %17  }
  0x81   :  { %20 = vst.msk [vmem:[#allocation0] sm:$0x1] %vm19_vm2, %v18_v7  }
  0x82   :  { %26 = vst.msk [vmem:[#allocation0] sm:$0x1] %vm25_vm3, %v24_v6  }
  0x89   :  { %v30_v8 = vld [vmem:[#allocation0] sm:$0x1] }
  0x8a   :  { %32 = vst [vmem:[%s56_s1] sm:$0x1] %v30_v8 }

// kernel: _hcselector_forward.1
= control target key start
LH: loop header
LB: loop body
LE: loop exit
PB: predicated region body
PF: predicated region fallthrough
CT: control target
= control target key end

     0   :  { %v17_v0 = vlaneseq  ;;  %s70_s0 = inlined_call_operand.vmem [shape: f32[1,128], index: 0, kind: input, shape index: {}]   ;;  %s71_s1 = inlined_call_operand.vmem [shape: f32[2,128], index: 1, kind: input, shape index: {}]   ;;  %s72_s2 = inlined_call_operand.vmem [shape: f32[2,128], index: 2, kind: input, shape index: {}]   ;;  %s73_s3 = inlined_call_operand.vmem [shape: f32[2,128], index: 3, kind: output, shape index: {}]  }
   0x1   :  { %v14_v1 = vld [vmem:[%s70_s0] sm:$0x1] }
   0x2   :  { %v18_v2 = vshrl.u32 %v17_v0, 7  ;;  %v24_v3 = vsub.f32 1.0, %v14_v1  ;;  %v15_v5 = vld [vmem:[%s71_s1] sm:$0x3] }
   0x3   :  { %v23_v6 = vld [vmem:[%s72_s2] sm:$0x3] }
   0x4   :  { %v19_v4 = vsub.s32 0, %v18_v2 }
   0x6   :  { %v20_v7 = vrot.slane %v14_v1, %v19_v4  ;;  %v29_v8 = vrot.slane %v24_v3, %v19_v4 }
   0x8   :  { %v22_v9 = vmul.f32 %v20_v7, %v15_v5  ;;  %v31_v10 = vmul.f32 %v29_v8, %v23_v6 }
   0xa   :  { %v32_v11 = vadd.f32 %v31_v10, %v22_v9 }
   0xc   :  { %33 = vst [vmem:[%s73_s3] sm:$0x3] %v32_v11 }

</bundles_post_ra>
